<compile_context>
chip_gen: v6e
topology: v6e:2x2x1
jax: 0.10.0
libtpu: 0.0.40
codegen_flags: <defaults>
</compile_context>

<pallas_src>
import functools

import jax
import jax.numpy as jnp
from jax.experimental import pallas as pl
from jax.experimental.pallas import tpu as pltpu


# ----------------------------------------------------------------------------
# Kernel 1: WeightDrop._setweights()  (dropout on W_hh^T, cast to compute dtype)
# ----------------------------------------------------------------------------
def _weight_drop_kernel(w_ref, u_ref, o_ref, *, dropout, apply_dropout):
    w = w_ref[...].astype(jnp.float32)
    if apply_dropout:
        # u_ref is (hr, 4H) for element dropout or (1, 4H) for variational
        # (per-gate-row) dropout; the (1, 4H) case broadcasts over the H rows.
        keep = (u_ref[...] >= dropout).astype(jnp.float32)
        w = w * (keep * (1.0 / (1.0 - dropout)))
    o_ref[...] = w.astype(o_ref.dtype)


# ----------------------------------------------------------------------------
# Kernel 2: single-layer LSTM forward with the (already dropped) W_hh.
# Gate layout along 4H is [i, f, o, g] (reordered in the wrapper).
# ----------------------------------------------------------------------------
def _lstm_recurrence_kernel(x_ref, wih_ref, whh_ref, bias_ref,     # VMEM in
                            y_ref, hn_ref, cn_ref,                 # VMEM out
                            h_sc, c_sc,                            # VMEM scratch
                            *, hidden, batch):
    H = hidden
    B = batch                      # already padded to a multiple of 8
    Tt = x_ref.shape[0] // B       # timesteps in this time tile (static)
    H3 = 3 * H

    @pl.when(pl.program_id(0) == 0)
    def _():
        h_sc[...] = jnp.zeros_like(h_sc)
        c_sc[...] = jnp.zeros_like(c_sc)

    # Hoisted input projection for the whole tile, bias folded in.  The only
    # per-step work left on the serial h-dependency chain is h @ W_hh + gates.
    gates_x = (jnp.dot(x_ref[...], wih_ref[...],
                       preferred_element_type=jnp.float32)
               + bias_ref[...])                                    # (Tt*B, 4H) f32

    w_hh = whh_ref[...]                                            # (H, 4H) compute dtype
    h = h_sc[...]                                                  # (B, H) f32
    c = c_sc[...]
    ys = []
    for t in range(Tt):
        g = gates_x[t * B:(t + 1) * B, :] + jnp.dot(
            h.astype(w_hh.dtype), w_hh, preferred_element_type=jnp.float32)
        sig = jax.nn.sigmoid(g[:, :H3])     # [i | f | o] -> one EUP call
        gg = jnp.tanh(g[:, H3:])            # [g]         -> one EUP call
        c = sig[:, H:2 * H] * c + sig[:, :H] * gg
        h = sig[:, 2 * H:H3] * jnp.tanh(c)
        ys.append(h)
    h_sc[...] = h
    c_sc[...] = c
    # One aligned full-tile store per grid step (B padded to a multiple of 8,
    # so the sublane concat offsets are tile-aligned).
    y_ref[...] = jnp.concatenate(ys, axis=0).astype(y_ref.dtype)
    # Cheap insurance: write the final-state outputs every tile instead of
    # relying on "only the last tile writes the resident block".
    hn_ref[...] = h.astype(hn_ref.dtype)
    cn_ref[...] = c.astype(cn_ref.dtype)


# ----------------------------------------------------------------------------
# Host-side helpers
# ----------------------------------------------------------------------------
def _dropout_uniforms(seed, H, H4, variational):
    """Uniforms for the weight_hh dropout mask, transposed (rows, 4H) layout,
    ORIGINAL [i,f,g,o] gate order.  Variational -> one value per gate row."""
    key = jax.random.PRNGKey(seed)
    if variational:
        return jax.random.uniform(key, (1, H4), jnp.float32)
    return jax.random.uniform(key, (H, H4), jnp.float32)


def _row_tile(H, cap=512):
    """Row tile for the one-shot weight-drop kernel (bounds its VMEM)."""
    if H <= cap:
        return H
    for hr in range(cap - cap % 8, 7, -8):
        if H % hr == 0:
            return hr
    return H


def _vmem_bytes_estimate(tt, Bp, I, H, in_itemsize):
    H4 = 4 * H
    tiles = 2 * tt * Bp * I * in_itemsize + 2 * tt * Bp * H * 4   # x / y double-buffered
    live = tt * Bp * H4 * 4 + tt * Bp * H * 4                      # gates_x + assembled y
    weights = 2 * (I * H4 + H * H4) * in_itemsize + 2 * H4 * 4
    state = 6 * Bp * H * 4
    return tiles + live + weights + state


def _pick_t_tile(T, Bp, I, H, in_itemsize, budget_bytes, max_unroll=32):
    candidates = [tt for tt in range(1, T + 1) if T % tt == 0]
    ok = [tt for tt in candidates
          if tt <= max_unroll
          and _vmem_bytes_estimate(tt, Bp, I, H, in_itemsize) <= budget_bytes]
    if not ok:
        ok = [1]
    pipelined = [tt for tt in ok if tt < T]     # prefer >=2 grid steps (pipelining)
    return max(pipelined) if pipelined else max(ok)


# ----------------------------------------------------------------------------
# WeightDrop(nn.LSTM(I, H), ['weight_hh_l0'], dropout).forward(x)
# ----------------------------------------------------------------------------
def weight_drop_lstm(x, w_ih, w_hh_raw, b_ih, b_hh, seed,
                     *, dropout=0.0, variational=False, training=True,
                     t_tile=None, compute_dtype=jnp.bfloat16):
    """x: (T, B, I) time-major.  PyTorch layout weights: w_ih (4H, I),
    w_hh_raw (4H, H), biases (4H,), gate order [i, f, g, o].
    Returns (y (T, B, H) f32, (h_n (B, H), c_n (B, H)))."""
    T, B, I = x.shape
    H4, H = w_hh_raw.shape
    assert H4 == 4 * H and w_ih.shape == (H4, I)

    Bp = ((B + 7) // 8) * 8                    # pad batch to full sublanes
    in_itemsize = jnp.dtype(compute_dtype).itemsize

    # gate reorder [i, f, g, o] -> [i, f, o, g] so sigmoid covers [:3H], tanh [3H:]
    perm = jnp.concatenate([jnp.arange(2 * H),
                            jnp.arange(3 * H, 4 * H),
                            jnp.arange(2 * H, 3 * H)])

    w_ih_t = jnp.transpose(w_ih[perm, :]).astype(compute_dtype)       # (I, 4H)
    w_hh_t = jnp.transpose(w_hh_raw[perm, :]).astype(jnp.float32)     # (H, 4H)
    bias = (b_ih + b_hh)[perm].reshape(1, H4).astype(jnp.float32)     # (1, 4H)
    u = _dropout_uniforms(seed, H, H4, variational)[:, perm]          # (H or 1, 4H)

    # torch quirk: the variational mask uses F.dropout(..., training=True)
    # unconditionally; the non-variational path uses training=self.training.
    apply_dropout = (float(dropout) > 0.0) and (bool(training) or bool(variational))

    # ---- step 1: WeightDrop._setweights() as a tiny one-shot Pallas kernel ----
    hr = _row_tile(H)
    if variational:
        u_spec = pl.BlockSpec((1, H4), lambda i: (0, 0))
    else:
        u_spec = pl.BlockSpec((hr, H4), lambda i: (i, 0))
    w_hh_drop = pl.pallas_call(
        functools.partial(_weight_drop_kernel, dropout=float(dropout),
                          apply_dropout=apply_dropout),
        out_shape=jax.ShapeDtypeStruct((H, H4), compute_dtype),
        grid=(H // hr,),
        in_specs=[pl.BlockSpec((hr, H4), lambda i: (i, 0)), u_spec],
        out_specs=pl.BlockSpec((hr, H4), lambda i: (i, 0)),
    )(w_hh_t, u)

    # ---- step 2: the wrapped LSTM forward ----
    x_p = x if Bp == B else jnp.pad(x, ((0, 0), (0, Bp - B), (0, 0)))
    x2 = x_p.reshape(T * Bp, I).astype(compute_dtype)

    try:
        phys_vmem = int(pltpu.get_tpu_info().vmem_capacity_bytes)
    except Exception:
        phys_vmem = 128 << 20
    budget = min(16 << 20, phys_vmem // 8)          # ~16 MiB v5e/v6e, ~8 MiB v7x

    if t_tile is None:
        t_tile = _pick_t_tile(T, Bp, I, H, in_itemsize, budget)
    assert T % t_tile == 0, "t_tile must divide T"
    n_tt = T // t_tile

    est = _vmem_bytes_estimate(t_tile, Bp, I, H, in_itemsize)
    vmem_limit = int(min(max(32 << 20, 2 * est + (4 << 20)), (phys_vmem * 3) // 4))

    kernel = functools.partial(_lstm_recurrence_kernel, hidden=H, batch=Bp)

    grid_spec = pltpu.PrefetchScalarGridSpec(
        num_scalar_prefetch=0,
        grid=(n_tt,),
        in_specs=[
            pl.BlockSpec((t_tile * Bp, I), lambda t: (t, 0)),   # x time tile
            pl.BlockSpec((I, H4), lambda t: (0, 0)),            # W_ih^T (resident)
            pl.BlockSpec((H, H4), lambda t: (0, 0)),            # dropped W_hh^T (resident)
            pl.BlockSpec((1, H4), lambda t: (0, 0)),            # fused bias
        ],
        out_specs=[
            pl.BlockSpec((t_tile * Bp, H), lambda t: (t, 0)),   # y time tile
            pl.BlockSpec((Bp, H), lambda t: (0, 0)),            # h_n
            pl.BlockSpec((Bp, H), lambda t: (0, 0)),            # c_n
        ],
        scratch_shapes=[
            pltpu.VMEM((Bp, H), jnp.float32),    # h carried across time tiles
            pltpu.VMEM((Bp, H), jnp.float32),    # c carried across time tiles
        ],
    )

    y2, h_n, c_n = pl.pallas_call(
        kernel,
        out_shape=(jax.ShapeDtypeStruct((T * Bp, H), jnp.float32),
                   jax.ShapeDtypeStruct((Bp, H), jnp.float32),
                   jax.ShapeDtypeStruct((Bp, H), jnp.float32)),
        grid_spec=grid_spec,
        compiler_params=pltpu.CompilerParams(
            dimension_semantics=("arbitrary",),      # time is inherently serial
            vmem_limit_bytes=vmem_limit),
    )(x2, w_ih_t, w_hh_drop, bias)

    y = y2.reshape(T, Bp, H)[:, :B, :]
    return y, (h_n[:B], c_n[:B])


# ----------------------------------------------------------------------------
# Pure-JAX reference (PyTorch LSTM semantics, h0 = c0 = 0, gate order [i,f,g,o])
# ----------------------------------------------------------------------------
def _lstm_ref(x, w_ih, w_hh, b_ih, b_hh):
    T, B, _ = x.shape
    H = w_hh.shape[1]
    h = jnp.zeros((B, H), jnp.float32)
    c = jnp.zeros((B, H), jnp.float32)
    ys = []
    for t in range(T):
        gates = x[t] @ w_ih.T + h @ w_hh.T + b_ih + b_hh
        i = jax.nn.sigmoid(gates[:, :H])
        f = jax.nn.sigmoid(gates[:, H:2 * H])
        g = jnp.tanh(gates[:, 2 * H:3 * H])
        o = jax.nn.sigmoid(gates[:, 3 * H:])
        c = f * c + i * g
        h = o * jnp.tanh(c)
        ys.append(h)
    return jnp.stack(ys), (h, c)


if __name__ == "__main__":
    T, B, I, H = 8, 2, 16, 32   # seq=8, batch=2, input=16, hidden=32 -> 4H = 128 lanes
    key = jax.random.PRNGKey(0)
    k1, k2, k3, k4, k5 = jax.random.split(key, 5)
    bound = 1.0 / jnp.sqrt(H)
    x = jax.random.normal(k1, (T, B, I), dtype=jnp.float32)
    w_ih = jax.random.uniform(k2, (4 * H, I), jnp.float32, -bound, bound)
    w_hh = jax.random.uniform(k3, (4 * H, H), jnp.float32, -bound, bound)
    b_ih = jax.random.uniform(k4, (4 * H,), jnp.float32, -bound, bound)
    b_hh = jax.random.uniform(k5, (4 * H,), jnp.float32, -bound, bound)

    # 1) dropout=0, f32 compute: strict parity with a plain LSTM forward.
    y0, (h0, c0) = weight_drop_lstm(x, w_ih, w_hh, b_ih, b_hh, seed=0,
                                    dropout=0.0, training=True,
                                    compute_dtype=jnp.float32)
    y_ref, (h_ref, c_ref) = _lstm_ref(x, w_ih, w_hh, b_ih, b_hh)
    assert jnp.allclose(y0, y_ref, atol=1e-4), "dropout=0 path mismatch"
    assert jnp.allclose(h0, h_ref, atol=1e-4) and jnp.allclose(c0, c_ref, atol=1e-4)

    # 2) dropout=0.25, training, f32 compute: must match an LSTM run with the
    #    same (deterministically re-derived) dropped hidden-to-hidden weight.
    p, seed = 0.25, 1234
    y1, (h1, c1) = weight_drop_lstm(x, w_ih, w_hh, b_ih, b_hh, seed=seed,
                                    dropout=p, variational=False, training=True,
                                    t_tile=4, compute_dtype=jnp.float32)
    u = _dropout_uniforms(seed, H, 4 * H, variational=False)
    w_hh_drop = w_hh * (u.T >= p).astype(jnp.float32) / (1.0 - p)
    y1_ref, (h1_ref, c1_ref) = _lstm_ref(x, w_ih, w_hh_drop, b_ih, b_hh)
    assert jnp.allclose(y1, y1_ref, atol=1e-4), "dropout path mismatch"
    assert jnp.allclose(h1, h1_ref, atol=1e-4) and jnp.allclose(c1, c1_ref, atol=1e-4)

    # 3) variational=True: per-gate-row mask, applied even when training=False
    #    (matches torch's training=True inside the variational mask dropout).
    y2v, _ = weight_drop_lstm(x, w_ih, w_hh, b_ih, b_hh, seed=seed,
                              dropout=p, variational=True, training=False,
                              t_tile=4, compute_dtype=jnp.float32)
    uv = _dropout_uniforms(seed, H, 4 * H, variational=True)       # (1, 4H)
    w_hh_vdrop = w_hh * (uv.T >= p).astype(jnp.float32) / (1.0 - p)
    y2_ref, _ = _lstm_ref(x, w_ih, w_hh_vdrop, b_ih, b_hh)
    assert jnp.allclose(y2v, y2_ref, atol=1e-4), "variational path mismatch"

    # 4) default bf16 compute path (MXU-friendly): looser tolerance vs f32 ref.
    yb, (hb, cb) = weight_drop_lstm(x, w_ih, w_hh, b_ih, b_hh, seed=seed,
                                    dropout=p, variational=False, training=True)
    assert jnp.allclose(yb, y1_ref, atol=5e-2), "bf16 path diverged from f32 reference"
    assert jnp.allclose(hb, h1_ref, atol=5e-2) and jnp.allclose(cb, c1_ref, atol=5e-2)

    jax.block_until_ready((y0, y1, y2v, yb, hb, cb))
    # TODO(synk): dropout mask is drawn from jax.random (deterministic per seed)
    # rather than torch's RNG stream, so it is not bit-identical to PyTorch.
    print("KERNEL_OK")
</pallas_src>

<mosaic_0001>
module attributes {stable_mosaic.version = 11 : i64} {
  func.func @_weight_drop_kernel(%arg0: i32, %arg1: memref<32x128xf32, #tpu.memory_space<vmem>>, %arg2: memref<32x128xf32, #tpu.memory_space<vmem>>, %arg3: memref<32x128xf32, #tpu.memory_space<vmem>>) attributes {dimension_semantics = [#tpu.dimension_semantics<arbitrary>], iteration_bounds = array<i64: 1>, scalar_prefetch = 0 : i64, scratch_operands = 0 : i64, tpu.core_type = #tpu.core_type<tc>, window_params = [{transform_indices = @transform_0, window_bounds = array<i64: 32, 128>}, {transform_indices = @transform_1, window_bounds = array<i64: 32, 128>}, {transform_indices = @transform_2, window_bounds = array<i64: 32, 128>}]} {
    %c0 = arith.constant 0 : index
    %c0_0 = arith.constant 0 : index
    %0 = vector.load %arg1[%c0, %c0_0] : memref<32x128xf32, #tpu.memory_space<vmem>>, vector<32x128xf32>
    %c0_1 = arith.constant 0 : index
    %c0_2 = arith.constant 0 : index
    %1 = vector.load %arg3[%c0_1, %c0_2] : memref<32x128xf32, #tpu.memory_space<vmem>>, vector<32x128xf32>
    tpu.vector_store %arg3[%c0_1, %c0_2], %0 {strides = array<i32>} : memref<32x128xf32, #tpu.memory_space<vmem>>, vector<32x128xf32>,
    return
  }
  func.func @transform_0(%arg0: i32) -> (i32, i32) {
    %c0_i32 = arith.constant 0 : i32
    %c0_i32_0 = arith.constant 0 : i32
    return %arg0, %c0_i32 : i32, i32
  }
  func.func @transform_1(%arg0: i32) -> (i32, i32) {
    %c0_i32 = arith.constant 0 : i32
    %c0_i32_0 = arith.constant 0 : i32
    return %arg0, %c0_i32 : i32, i32
  }
  func.func @transform_2(%arg0: i32) -> (i32, i32) {
    %c0_i32 = arith.constant 0 : i32
    %c0_i32_0 = arith.constant 0 : i32
    return %arg0, %c0_i32 : i32, i32
  }
}

</mosaic_0001>

<bundles_post_ra>
// kernel: tpu_custom_call.1
= control target key start
LH: loop header
LB: loop body
LE: loop exit
PB: predicated region body
PF: predicated region fallthrough
CT: control target
= control target key end

     0   :  { %7 = vsyncpa [#allocation3], 0  ;;  %s175_s0 = inlined_call_operand.hbm [shape: f32[32,128], index: 0, kind: input, shape index: {}]   ;;  %s176_s1 = inlined_call_operand.hbm [shape: f32[32,128], index: 1, kind: input, shape index: {}]   ;;  %s177_s2 = inlined_call_operand.hbm [shape: f32[32,128], index: 2, kind: output, shape index: {}]  }
   0x1   :  { %8 = vsyncpa [#allocation6], 0 }
   0x2   :  { %9 = vsyncpa [#allocation4], 0  ;;  %s137_s9 = smov [#allocation2]  }
   0x3   :  { %s15_s10 = sshll.u32 %s137_s9, 4  ;;  %s16_s10 = int_to_ptr.vmem [resolvable:$true] %s15_s10 }
   0x4   :  { %s79_s11 = scalar_lea.vmem %s16_s10, 512  ;;  %p84_p1 = scmp.lt.s32.totalorder %s16_s10, %s16_s10 }
   0x5   :  { %p80_p0 = scmp.ne.s32.totalorder %s16_s10, %s79_s11  ;;  %p85_p2 = scmp.lt.s32.totalorder %s79_s11, %s79_s11 }
   0x7   :  { %p86_p3 = por %p85_p2, %p84_p1 }
   0x9   :  { %p87_p4 = pnand %p86_p3, %p80_p0 }
   0xb   :  { %90 = shalt.err (!%p87_p4)
}
   0xc   :  { %s138_s12 = smov 128   ;;  %s139_s13 = smov 8  }
   0xd   :  { %21 = dma.hbm_to_vmem [thread:$0]  %s175_s0, 512, %s16_s10, [#allocation3], %s138_s12, %s138_s12, %s139_s13  }
   0xe   :  { %s140_s16 = smov [#allocation5]  }
   0xf   :  { %s27_s17 = sshll.u32 %s140_s16, 4  ;;  %s28_s17 = int_to_ptr.vmem [resolvable:$true] %s27_s17 }
  0x10   :  { %s99_s18 = scalar_lea.vmem %s28_s17, 512  ;;  %p104_p6 = scmp.lt.s32.totalorder %s28_s17, %s28_s17 }
  0x11   :  { %p100_p5 = scmp.ne.s32.totalorder %s28_s17, %s99_s18  ;;  %p105_p7 = scmp.lt.s32.totalorder %s99_s18, %s99_s18 }
  0x13   :  { %p106_p8 = por %p105_p7, %p104_p6 }
  0x15   :  { %p107_p9 = pnand %p106_p8, %p100_p5 }
  0x17   :  { %110 = shalt.err (!%p107_p9)
}
  0x18   :  { %33 = dma.hbm_to_vmem [thread:$0]  %s176_s1, 512, %s28_s17, [#allocation6], %s138_s12, %s138_s12, %s139_s13  }
  0x19   :  { %131 = dma.done.wait [#allocation3], 512  }
  0x1a   :  { %132 = vsyncadd [#allocation3], 4294966784 }
  0x1b   :  { %133 = dma.done.wait [#allocation6], 512  }
  0x1c   :  { %134 = vsyncadd [#allocation6], 4294966784  ;;  %s141_s0 = smov [#allocation7]   ;;  %v40_v0 = vld [vmem:[#allocation2] sm:$0xff]  ;;  %v41_v1 = vld [vmem:[#allocation2 + $0x8] sm:$0xff] }
  0x1d   :  { %s53_s21 = sshll.u32 %s141_s0, 4  ;;  %v42_v2 = vld [vmem:[#allocation2 + $0x10] sm:$0xff]  ;;  %44 = vst [vmem:[#allocation7] sm:$0xff] %v40_v0  ;;  %45 = vst [vmem:[#allocation7 + $0x8] sm:$0xff] %v41_v1  ;;  %v43_v3 = vld [vmem:[#allocation2 + $0x18] sm:$0xff]  ;;  %s54_s21 = int_to_ptr.vmem [resolvable:$true] %s53_s21 }
  0x1e   :  { %46 = vst [vmem:[#allocation7 + $0x10] sm:$0xff] %v42_v2  ;;  %47 = vst [vmem:[#allocation7 + $0x18] sm:$0xff] %v43_v3  ;;  %s111_s22 = scalar_lea.vmem %s54_s21, 512  ;;  %p116_p11 = scmp.lt.s32.totalorder %s54_s21, %s54_s21 }
  0x1f   :  { %p112_p10 = scmp.ne.s32.totalorder %s54_s21, %s111_s22  ;;  %p117_p12 = scmp.lt.s32.totalorder %s111_s22, %s111_s22 }
  0x21   :  { %p118_p13 = por %p117_p12, %p116_p11 }
  0x23   :  { %p119_p0 = pnand %p118_p13, %p112_p10 }
  0x25   :  { %122 = shalt.err (!%p119_p0)
}
  0x26   :  { %59 = dma.vmem_to_hbm [thread:$0]  %s54_s21, 512, %s177_s2, [#allocation4], %s138_s12, %s138_s12, %s139_s13  }
  0x27   :  { %135 = dma.done.wait [#allocation4], 512  }
  0x28   :  { %136 = vsyncadd [#allocation4], 4294966784 }
  0x29   :  { %63 = vsyncpa [#allocation3], 1 }
  0x2a   :  { %64 = vsyncpa [#allocation6], 1 }
  0x2b   :  { %65 = vsyncpa [#allocation4], 1 }

</bundles_post_ra>
